<compile_context>
chip_gen: v7x
topology: tpu7x:2x2x1
jax: 0.10.0
libtpu: 0.0.40
codegen_flags: <defaults>
</compile_context>

<pallas_src>
import math
import functools

import jax
import jax.numpy as jnp
import numpy as np
from jax import lax
from jax.experimental import pallas as pl
from jax.experimental.pallas import tpu as pltpu

EPS = 1e-5
NEG_BIG = -1e30  # additive causal bias (finite -> no inf-inf NaN risk)


def _vmem_limit_bytes():
    # Per-generation budget with headroom for compiler scratch / semaphores:
    # ~54 MiB on v7x (64 MiB/TC), ~109 MiB on v5e/v6e (128 MiB/TC).
    try:
        cap = int(pltpu.get_tpu_info().vmem_capacity_bytes)
        return int(cap * 0.85)
    except Exception:
        return 48 * 1024 * 1024  # conservative fallback, safe on all gens


VMEM_LIMIT = _vmem_limit_bytes()


def _layernorm(v, g, b):
    mu = jnp.mean(v, axis=-1, keepdims=True)
    var = jnp.mean((v - mu) ** 2, axis=-1, keepdims=True)
    return (v - mu) * lax.rsqrt(var + EPS) * g + b


def _pick_q_tile(S):
    # Single tile for modest S (no K/V recompute); otherwise 512/256-ish tiles.
    if S <= 512:
        return S
    for tq in (512, 384, 256, 128, 64, 32, 16, 8):
        if S % tq == 0:
            return tq
    return S


def _pick_vocab_tile(V, max_tile=8192):
    # Largest divisor of V that is 256-aligned (v6e/v7x MXU), else 128-aligned,
    # else the whole vocab (toy sizes).
    for align in (256, 128):
        tv = (min(V, max_tile) // align) * align
        while tv >= align:
            if V % tv == 0:
                return tv
            tv -= align
    return V


# ---------------------------------------------------------------------------
# Transformer block kernel.  Grid = (batch, query-tile).
#   xq_ref  : (1, TQ, D) bf16   residual rows of the current query tile
#   xkv_ref : (1, S,  D) bf16   full sequence (keys / values source)
#   wq      : (D, D)   bf16     (1/sqrt(Dh) folded in)
#   wkv     : (D, 2D)  bf16     columns = [K | V]
#   wproj   : (D, D)   bf16
#   w1 / w2 : (D, 4D) / (4D, D) bf16
#   LN params are (1, D) f32.
# ---------------------------------------------------------------------------
def block_kernel(xq_ref, xkv_ref, ln1w_ref, ln1b_ref, wq_ref, wkv_ref,
                 wproj_ref, ln2w_ref, ln2b_ref, w1_ref, w2_ref, o_ref, *,
                 n_heads, q_block_offset):
    TQ, D = xq_ref.shape[1], xq_ref.shape[2]
    S = xkv_ref.shape[1]
    H = n_heads
    Dh = D // H

    xq = xq_ref[0].astype(jnp.float32)        # (TQ, D) residual (query rows)
    xkv = xkv_ref[0].astype(jnp.float32)      # (S, D)  full rows

    # --- attention branch (pre-LN) ------------------------------------------
    hq = _layernorm(xq, ln1w_ref[...], ln1b_ref[...]).astype(jnp.bfloat16)
    hkv = _layernorm(xkv, ln1w_ref[...], ln1b_ref[...]).astype(jnp.bfloat16)

    # fused projections at full MXU width (N = D and N = 2D)
    q = jnp.dot(hq, wq_ref[...], preferred_element_type=jnp.float32)      # (TQ, D)
    kv = jnp.dot(hkv, wkv_ref[...], preferred_element_type=jnp.float32)   # (S, 2D)
    q = q.astype(jnp.bfloat16)
    k = kv[:, :D].astype(jnp.bfloat16)
    v = kv[:, D:].astype(jnp.bfloat16)

    # additive causal bias: built once per (TQ, S) tile, shared across heads
    q_start = (q_block_offset + pl.program_id(1)) * TQ
    q_pos = q_start + lax.broadcasted_iota(jnp.int32, (TQ, S), 0)
    k_pos = lax.broadcasted_iota(jnp.int32, (TQ, S), 1)
    bias = jnp.where(k_pos <= q_pos, 0.0, NEG_BIG).astype(jnp.float32)

    # per-head scores / context (Dh-wide MXU passes are inherent to attention);
    # lane slices of the fused Q/K/V keep lowering simple and avoid relayouts.
    ctx_heads = []
    for hd in range(H):                                        # static unroll
        sl = slice(hd * Dh, (hd + 1) * Dh)
        s = lax.dot_general(q[:, sl], k[:, sl],
                            dimension_numbers=(((1,), (1,)), ((), ())),
                            preferred_element_type=jnp.float32)            # (TQ, S)
        s = s + bias
        p = jnp.exp(s - jnp.max(s, axis=-1, keepdims=True))
        p = p * pl.reciprocal(jnp.sum(p, axis=-1, keepdims=True), approx=True)
        # TODO(synk): attention dropout skipped (eval-mode identity)
        ctx_heads.append(
            jnp.dot(p.astype(jnp.bfloat16), v[:, sl],
                    preferred_element_type=jnp.float32).astype(jnp.bfloat16))

    ctx = jnp.concatenate(ctx_heads, axis=-1)                              # (TQ, D)
    y = jnp.dot(ctx, wproj_ref[...], preferred_element_type=jnp.float32)   # (TQ, D)
    # TODO(synk): projection dropout skipped (eval-mode identity)
    x2 = xq + y

    # --- FFNN branch (pre-LN) ------------------------------------------------
    h2 = _layernorm(x2, ln2w_ref[...], ln2b_ref[...]).astype(jnp.bfloat16)
    ff = jnp.dot(h2, w1_ref[...], preferred_element_type=jnp.float32)      # (TQ, 4D)
    ff = jax.nn.gelu(ff, approximate=True).astype(jnp.bfloat16)
    ff = jnp.dot(ff, w2_ref[...], preferred_element_type=jnp.float32)      # (TQ, D)
    # TODO(synk): FFNN dropout skipped (eval-mode identity)
    o_ref[0] = (x2 + ff).astype(jnp.bfloat16)


def transformer_block(x, p, n_heads, *, last_tile_only=False):
    B, S, D = x.shape
    TQ = _pick_q_tile(S)
    NQ = S // TQ

    if last_tile_only:
        # Only the last query tile feeds the LM head -> prune the rest.
        grid = (B, 1)
        q_block_offset = NQ - 1
        out_S = TQ
        xq_map = lambda b, qi: (b, NQ - 1 + qi, 0)
    else:
        grid = (B, NQ)
        q_block_offset = 0
        out_S = S
        xq_map = lambda b, qi: (b, qi, 0)

    full = lambda shape: pl.BlockSpec(shape, lambda b, qi: (0,) * len(shape))
    kernel = functools.partial(block_kernel, n_heads=n_heads,
                               q_block_offset=q_block_offset)

    return pl.pallas_call(
        kernel,
        out_shape=jax.ShapeDtypeStruct((B, out_S, D), jnp.bfloat16),
        grid=grid,
        in_specs=[
            pl.BlockSpec((1, TQ, D), xq_map),                 # query-tile rows
            pl.BlockSpec((1, S, D), lambda b, qi: (b, 0, 0)),  # full rows (K/V)
            full((1, D)), full((1, D)),                       # ln1 w, b
            full((D, D)),                                     # wq (scaled)
            full((D, 2 * D)),                                 # wkv
            full((D, D)),                                     # wproj
            full((1, D)), full((1, D)),                       # ln2 w, b
            full((D, 4 * D)),                                 # W1
            full((4 * D, D)),                                 # W2
        ],
        out_specs=pl.BlockSpec((1, TQ, D), lambda b, qi: (b, qi, 0)),
        compiler_params=pltpu.CompilerParams(
            dimension_semantics=("parallel", "parallel"),
            vmem_limit_bytes=VMEM_LIMIT),
    )(x, x, p["ln1_w"], p["ln1_b"], p["wq"], p["wkv"], p["wproj"],
      p["ln2_w"], p["ln2_b"], p["w1"], p["w2"])


# ---------------------------------------------------------------------------
# Final LayerNorm + LM head on the last token of every sequence.
# LayerNorm is hoisted out of the per-vocab-tile loop (computed once into a
# VMEM scratch); the grid streams lane-dense vocab tiles of W_head.
# ---------------------------------------------------------------------------
def head_kernel(x_ref, lnw_ref, lnb_ref, wh_ref, o_ref, h_scratch):
    @pl.when(pl.program_id(0) == 0)
    def _():
        h_scratch[...] = _layernorm(x_ref[...].astype(jnp.float32),
                                    lnw_ref[...], lnb_ref[...]).astype(jnp.bfloat16)
    o_ref[...] = jnp.dot(h_scratch[...], wh_ref[...],
                         preferred_element_type=jnp.float32)


def final_head(x_last, lnw, lnb, wh):
    B, D = x_last.shape
    V = wh.shape[1]
    TV = _pick_vocab_tile(V)
    logits = pl.pallas_call(
        head_kernel,
        out_shape=jax.ShapeDtypeStruct((B, V), jnp.float32),
        grid=(V // TV,),
        in_specs=[
            pl.BlockSpec((B, D), lambda j: (0, 0)),
            pl.BlockSpec((1, D), lambda j: (0, 0)),
            pl.BlockSpec((1, D), lambda j: (0, 0)),
            pl.BlockSpec((D, TV), lambda j: (0, j)),          # streamed vocab tile
        ],
        out_specs=pl.BlockSpec((B, TV), lambda j: (0, j)),
        scratch_shapes=[pltpu.VMEM((B, D), jnp.bfloat16)],
        compiler_params=pltpu.CompilerParams(
            dimension_semantics=("arbitrary",),
            vmem_limit_bytes=VMEM_LIMIT),
    )(x_last, lnw, lnb, wh)
    return logits[:, None, :]                                  # (B, 1, V)


# ---------------------------------------------------------------------------
# Full forward (targets=None path): embeddings (XLA glue) -> blocks -> head.
# ---------------------------------------------------------------------------
def transformer_forward(token_ids, pp, n_heads):
    B, S = token_ids.shape
    tok = jnp.take(pp["tok_emb"], token_ids, axis=0)           # (B, S, D) f32
    x = (tok + pp["pos_emb"][:S][None]).astype(jnp.bfloat16)   # dropout = identity
    n_layers = len(pp["blocks"])
    for li, blk in enumerate(pp["blocks"]):
        x = transformer_block(x, blk, n_heads,
                              last_tile_only=(li == n_layers - 1))
    x_last = x[:, -1, :]                                       # (B, D) bf16
    return final_head(x_last, pp["lnf_w"], pp["lnf_b"], pp["w_head"]), None


# ---------------------------------------------------------------------------
# Parameter prep: bf16 weights, 1/sqrt(Dh) folded into Q, fused K|V weight,
# LayerNorm params as (1, D) f32.
# ---------------------------------------------------------------------------
def prepare_params(params, n_heads):
    D = params["tok_emb"].shape[1]
    Dh = D // n_heads
    scale = 1.0 / math.sqrt(Dh)
    bf = lambda a: a.astype(jnp.bfloat16)
    r2 = lambda a: a.reshape(1, -1).astype(jnp.float32)

    blocks = []
    for p in params["blocks"]:
        wq, wk, wv = jnp.split(p["wqkv"], 3, axis=1)
        blocks.append({
            "ln1_w": r2(p["ln1_w"]), "ln1_b": r2(p["ln1_b"]),
            "wq": bf(wq * scale),                              # scale folded (free)
            "wkv": bf(jnp.concatenate([wk, wv], axis=1)),      # (D, 2D)
            "wproj": bf(p["wproj"]),
            "ln2_w": r2(p["ln2_w"]), "ln2_b": r2(p["ln2_b"]),
            "w1": bf(p["w1"]), "w2": bf(p["w2"]),
        })
    return {
        "tok_emb": params["tok_emb"], "pos_emb": params["pos_emb"],
        "lnf_w": r2(params["lnf_w"]), "lnf_b": r2(params["lnf_b"]),
        "w_head": bf(params["w_head"]),
        "blocks": blocks,
    }


# ---------------------------------------------------------------------------
# Pure-JAX reference with the same mixed-precision discipline (correctness).
# ---------------------------------------------------------------------------
def reference_forward(token_ids, pp, n_heads):
    B, S = token_ids.shape
    D = pp["tok_emb"].shape[1]
    H, Dh = n_heads, D // n_heads
    x = (jnp.take(pp["tok_emb"], token_ids, axis=0)
         + pp["pos_emb"][:S][None]).astype(jnp.bfloat16)
    mask = jnp.tril(jnp.ones((S, S), bool))
    for p in pp["blocks"]:
        xf = x.astype(jnp.float32)
        h = _layernorm(xf, p["ln1_w"], p["ln1_b"]).astype(jnp.bfloat16)
        q = jnp.einsum('bsd,de->bse', h, p["wq"], preferred_element_type=jnp.float32)
        kv = jnp.einsum('bsd,de->bse', h, p["wkv"], preferred_element_type=jnp.float32)
        k, v = kv[..., :D], kv[..., D:]
        q = q.reshape(B, S, H, Dh).transpose(0, 2, 1, 3).astype(jnp.bfloat16)
        k = k.reshape(B, S, H, Dh).transpose(0, 2, 1, 3).astype(jnp.bfloat16)
        v = v.reshape(B, S, H, Dh).transpose(0, 2, 1, 3).astype(jnp.bfloat16)
        att = jnp.einsum('bhqe,bhke->bhqk', q, k, preferred_element_type=jnp.float32)
        att = jnp.where(mask[None, None], att, -jnp.inf)
        att = jax.nn.softmax(att, axis=-1)
        ctx = jnp.einsum('bhqk,bhke->bhqe', att.astype(jnp.bfloat16), v,
                         preferred_element_type=jnp.float32)
        ctx = ctx.transpose(0, 2, 1, 3).reshape(B, S, D).astype(jnp.bfloat16)
        y = jnp.einsum('bsd,de->bse', ctx, p["wproj"],
                       preferred_element_type=jnp.float32)
        x2 = xf + y
        h2 = _layernorm(x2, p["ln2_w"], p["ln2_b"]).astype(jnp.bfloat16)
        ff = jnp.einsum('bsd,df->bsf', h2, p["w1"], preferred_element_type=jnp.float32)
        ff = jax.nn.gelu(ff, approximate=True).astype(jnp.bfloat16)
        ff = jnp.einsum('bsf,fd->bsd', ff, p["w2"], preferred_element_type=jnp.float32)
        x = (x2 + ff).astype(jnp.bfloat16)
    xl = _layernorm(x[:, -1, :].astype(jnp.float32),
                    pp["lnf_w"], pp["lnf_b"]).astype(jnp.bfloat16)
    logits = jnp.einsum('bd,dv->bv', xl, pp["w_head"],
                        preferred_element_type=jnp.float32)
    return logits[:, None, :]


def init_params(key, n_dims, n_heads, max_len, vocab_size, n_layers):
    ks = iter(jax.random.split(key, 4 + 8 * n_layers))
    std = 0.02
    params = {
        "tok_emb": jax.random.normal(next(ks), (vocab_size, n_dims), jnp.float32) * std,
        "pos_emb": jax.random.normal(next(ks), (max_len, n_dims), jnp.float32) * std,
        "lnf_w": jnp.ones((n_dims,), jnp.float32),
        "lnf_b": jnp.zeros((n_dims,), jnp.float32),
        "w_head": jax.random.normal(next(ks), (n_dims, vocab_size), jnp.float32) * std,
        "blocks": [],
    }
    _ = next(ks)
    for _ in range(n_layers):
        params["blocks"].append({
            "ln1_w": jnp.ones((n_dims,), jnp.float32),
            "ln1_b": jnp.zeros((n_dims,), jnp.float32),
            "wqkv": jax.random.normal(next(ks), (n_dims, 3 * n_dims), jnp.float32) * std,
            "wproj": jax.random.normal(next(ks), (n_dims, n_dims), jnp.float32) * std,
            "ln2_w": jnp.ones((n_dims,), jnp.float32),
            "ln2_b": jnp.zeros((n_dims,), jnp.float32),
            "w1": jax.random.normal(next(ks), (n_dims, 4 * n_dims), jnp.float32) * std,
            "w2": jax.random.normal(next(ks), (4 * n_dims, n_dims), jnp.float32) * std,
        })
    return params


if __name__ == "__main__":
    # Small, forward-consistent shapes.
    B, S = 2, 8
    n_dims, n_heads, max_len, vocab_size, n_layers = 32, 4, 16, 64, 2

    key = jax.random.PRNGKey(0)
    k_par, k_tok = jax.random.split(key)
    raw_params = init_params(k_par, n_dims, n_heads, max_len, vocab_size, n_layers)
    pp = prepare_params(raw_params, n_heads)
    token_ids = jax.random.randint(k_tok, (B, S), 0, vocab_size, dtype=jnp.int32)

    logits, loss = transformer_forward(token_ids, pp, n_heads)
    logits = jax.block_until_ready(logits)

    ref = jax.block_until_ready(reference_forward(token_ids, pp, n_heads))
    assert logits.shape == (B, 1, vocab_size)
    np.testing.assert_allclose(np.asarray(logits), np.asarray(ref),
                               atol=2e-2, rtol=2e-2)

    print("KERNEL_OK")
</pallas_src>

<mosaic_0001>
module attributes {stable_mosaic.version = 11 : i64} {
  func.func @block_kernel(%arg0: i32, %arg1: i32, %arg2: memref<1x8x32xbf16, #tpu.memory_space<vmem>>, %arg3: memref<1x8x32xbf16, #tpu.memory_space<vmem>>, %arg4: memref<1x32xf32, #tpu.memory_space<vmem>>, %arg5: memref<1x32xf32, #tpu.memory_space<vmem>>, %arg6: memref<32x32xbf16, #tpu.memory_space<vmem>>, %arg7: memref<32x64xbf16, #tpu.memory_space<vmem>>, %arg8: memref<32x32xbf16, #tpu.memory_space<vmem>>, %arg9: memref<1x32xf32, #tpu.memory_space<vmem>>, %arg10: memref<1x32xf32, #tpu.memory_space<vmem>>, %arg11: memref<32x128xbf16, #tpu.memory_space<vmem>>, %arg12: memref<128x32xbf16, #tpu.memory_space<vmem>>, %arg13: memref<1x8x32xbf16, #tpu.memory_space<vmem>>) attributes {dimension_semantics = [#tpu.dimension_semantics<parallel>, #tpu.dimension_semantics<parallel>], iteration_bounds = array<i64: 2, 1>, scalar_prefetch = 0 : i64, scratch_operands = 0 : i64, tpu.core_type = #tpu.core_type<tc>, window_params = [{transform_indices = @transform_0, window_bounds = array<i64: 1, 8, 32>}, {transform_indices = @transform_1, window_bounds = array<i64: 1, 8, 32>}, {pipeline_mode = #tpu.pipeline_mode<synchronous>, transform_indices = @transform_2, window_bounds = array<i64: 1, 32>}, {pipeline_mode = #tpu.pipeline_mode<synchronous>, transform_indices = @transform_3, window_bounds = array<i64: 1, 32>}, {pipeline_mode = #tpu.pipeline_mode<synchronous>, transform_indices = @transform_4, window_bounds = array<i64: 32, 32>}, {pipeline_mode = #tpu.pipeline_mode<synchronous>, transform_indices = @transform_5, window_bounds = array<i64: 32, 64>}, {pipeline_mode = #tpu.pipeline_mode<synchronous>, transform_indices = @transform_6, window_bounds = array<i64: 32, 32>}, {pipeline_mode = #tpu.pipeline_mode<synchronous>, transform_indices = @transform_7, window_bounds = array<i64: 1, 32>}, {pipeline_mode = #tpu.pipeline_mode<synchronous>, transform_indices = @transform_8, window_bounds = array<i64: 1, 32>}, {pipeline_mode = #tpu.pipeline_mode<synchronous>, transform_indices = @transform_9, window_bounds = array<i64: 32, 128>}, {pipeline_mode = #tpu.pipeline_mode<synchronous>, transform_indices = @transform_10, window_bounds = array<i64: 128, 32>}, {transform_indices = @transform_11, window_bounds = array<i64: 1, 8, 32>}]} {
    %c0 = arith.constant 0 : index
    %c0_0 = arith.constant 0 : index
    %c0_1 = arith.constant 0 : index
    %0 = vector.load %arg2[%c0, %c0_0, %c0_1] : memref<1x8x32xbf16, #tpu.memory_space<vmem>>, vector<1x8x32xbf16>
    %1 = vector.shape_cast %0 : vector<1x8x32xbf16> to vector<8x32xbf16>
    %2 = arith.extf %1 : vector<8x32xbf16> to vector<8x32xf32>
    %c0_2 = arith.constant 0 : index
    %c0_3 = arith.constant 0 : index
    %c0_4 = arith.constant 0 : index
    %3 = vector.load %arg3[%c0_2, %c0_3, %c0_4] : memref<1x8x32xbf16, #tpu.memory_space<vmem>>, vector<1x8x32xbf16>
    %4 = vector.shape_cast %3 : vector<1x8x32xbf16> to vector<8x32xbf16>
    %5 = arith.extf %4 : vector<8x32xbf16> to vector<8x32xf32>
    %c0_5 = arith.constant 0 : index
    %c0_6 = arith.constant 0 : index
    %6 = vector.load %arg4[%c0_5, %c0_6] : memref<1x32xf32, #tpu.memory_space<vmem>>, vector<1x32xf32>
    %c0_7 = arith.constant 0 : index
    %c0_8 = arith.constant 0 : index
    %7 = vector.load %arg5[%c0_7, %c0_8] : memref<1x32xf32, #tpu.memory_space<vmem>>, vector<1x32xf32>
    %cst = arith.constant dense<0.000000e+00> : vector<8xf32>
    %8 = vector.multi_reduction <add>, %2, %cst [1] : vector<8x32xf32> to vector<8xf32>
    %9 = vector.shape_cast %8 : vector<8xf32> to vector<8x1xf32>
    %cst_9 = arith.constant 3.200000e+01 : f32
    %10 = vector.broadcast %cst_9 : f32 to vector<8x1xf32>
    %11 = arith.divf %9, %10 : vector<8x1xf32>
    %12 = vector.broadcast %11 : vector<8x1xf32> to vector<8x32xf32>
    %13 = arith.subf %2, %12 : vector<8x32xf32>
    %14 = arith.mulf %13, %13 : vector<8x32xf32>
    %cst_10 = arith.constant dense<0.000000e+00> : vector<8xf32>
    %15 = vector.multi_reduction <add>, %14, %cst_10 [1] : vector<8x32xf32> to vector<8xf32>
    %16 = vector.shape_cast %15 : vector<8xf32> to vector<8x1xf32>
    %cst_11 = arith.constant 3.200000e+01 : f32
    %17 = vector.broadcast %cst_11 : f32 to vector<8x1xf32>
    %18 = arith.divf %16, %17 : vector<8x1xf32>
    %19 = vector.broadcast %11 : vector<8x1xf32> to vector<8x32xf32>
    %20 = arith.subf %2, %19 : vector<8x32xf32>
    %cst_12 = arith.constant 9.99999974E-6 : f32
    %21 = vector.broadcast %cst_12 : f32 to vector<8x1xf32>
    %22 = arith.addf %18, %21 : vector<8x1xf32>
    %23 = math.rsqrt %22 : vector<8x1xf32>
    %24 = vector.broadcast %23 : vector<8x1xf32> to vector<8x32xf32>
    %25 = arith.mulf %20, %24 : vector<8x32xf32>
    %26 = vector.broadcast %6 : vector<1x32xf32> to vector<8x32xf32>
    %27 = arith.mulf %25, %26 : vector<8x32xf32>
    %28 = vector.broadcast %7 : vector<1x32xf32> to vector<8x32xf32>
    %29 = arith.addf %27, %28 : vector<8x32xf32>
    %30 = arith.truncf %29 : vector<8x32xf32> to vector<8x32xbf16>
    %c0_13 = arith.constant 0 : index
    %c0_14 = arith.constant 0 : index
    %31 = vector.load %arg4[%c0_13, %c0_14] : memref<1x32xf32, #tpu.memory_space<vmem>>, vector<1x32xf32>
    %c0_15 = arith.constant 0 : index
    %c0_16 = arith.constant 0 : index
    %32 = vector.load %arg5[%c0_15, %c0_16] : memref<1x32xf32, #tpu.memory_space<vmem>>, vector<1x32xf32>
    %cst_17 = arith.constant dense<0.000000e+00> : vector<8xf32>
    %33 = vector.multi_reduction <add>, %5, %cst_17 [1] : vector<8x32xf32> to vector<8xf32>
    %34 = vector.shape_cast %33 : vector<8xf32> to vector<8x1xf32>
    %cst_18 = arith.constant 3.200000e+01 : f32
    %35 = vector.broadcast %cst_18 : f32 to vector<8x1xf32>
    %36 = arith.divf %34, %35 : vector<8x1xf32>
    %37 = vector.broadcast %36 : vector<8x1xf32> to vector<8x32xf32>
    %38 = arith.subf %5, %37 : vector<8x32xf32>
    %39 = arith.mulf %38, %38 : vector<8x32xf32>
    %cst_19 = arith.constant dense<0.000000e+00> : vector<8xf32>
    %40 = vector.multi_reduction <add>, %39, %cst_19 [1] : vector<8x32xf32> to vector<8xf32>
    %41 = vector.shape_cast %40 : vector<8xf32> to vector<8x1xf32>
    %cst_20 = arith.constant 3.200000e+01 : f32
    %42 = vector.broadcast %cst_20 : f32 to vector<8x1xf32>
    %43 = arith.divf %41, %42 : vector<8x1xf32>
    %44 = vector.broadcast %36 : vector<8x1xf32> to vector<8x32xf32>
    %45 = arith.subf %5, %44 : vector<8x32xf32>
    %cst_21 = arith.constant 9.99999974E-6 : f32
    %46 = vector.broadcast %cst_21 : f32 to vector<8x1xf32>
    %47 = arith.addf %43, %46 : vector<8x1xf32>
    %48 = math.rsqrt %47 : vector<8x1xf32>
    %49 = vector.broadcast %48 : vector<8x1xf32> to vector<8x32xf32>
    %50 = arith.mulf %45, %49 : vector<8x32xf32>
    %51 = vector.broadcast %31 : vector<1x32xf32> to vector<8x32xf32>
    %52 = arith.mulf %50, %51 : vector<8x32xf32>
    %53 = vector.broadcast %32 : vector<1x32xf32> to vector<8x32xf32>
    %54 = arith.addf %52, %53 : vector<8x32xf32>
    %55 = arith.truncf %54 : vector<8x32xf32> to vector<8x32xbf16>
    %c0_22 = arith.constant 0 : index
    %c0_23 = arith.constant 0 : index
    %56 = vector.load %arg6[%c0_22, %c0_23] : memref<32x32xbf16, #tpu.memory_space<vmem>>, vector<32x32xbf16>
    %cst_24 = arith.constant dense<0.000000e+00> : vector<8x32xf32>
    %57 = tpu.matmul %30, %56, %cst_24 {dimension_numbers = #tpu.dot_dimension_numbers<[1], [0], [0], [1], [0, 0, 1, 1], [], []>} : vector<8x32xbf16>, vector<32x32xbf16>, vector<8x32xf32> -> vector<8x32xf32>
    %c0_25 = arith.constant 0 : index
    %c0_26 = arith.constant 0 : index
    %58 = vector.load %arg7[%c0_25, %c0_26] : memref<32x64xbf16, #tpu.memory_space<vmem>>, vector<32x64xbf16>
    %cst_27 = arith.constant dense<0.000000e+00> : vector<8x64xf32>
    %59 = tpu.matmul %55, %58, %cst_27 {dimension_numbers = #tpu.dot_dimension_numbers<[1], [0], [0], [1], [0, 0, 1, 1], [], []>} : vector<8x32xbf16>, vector<32x64xbf16>, vector<8x64xf32> -> vector<8x64xf32>
    %60 = arith.truncf %57 : vector<8x32xf32> to vector<8x32xbf16>
    %61 = vector.extract_strided_slice %59 {offsets = [0, 0], sizes = [8, 32], strides = [1, 1]} : vector<8x64xf32> to vector<8x32xf32>
    %62 = arith.truncf %61 : vector<8x32xf32> to vector<8x32xbf16>
    %63 = vector.extract_strided_slice %59 {offsets = [0, 32], sizes = [8, 32], strides = [1, 1]} : vector<8x64xf32> to vector<8x32xf32>
    %64 = arith.truncf %63 : vector<8x32xf32> to vector<8x32xbf16>
    %c0_i32 = arith.constant 0 : i32
    %65 = arith.addi %c0_i32, %arg1 : i32
    %c8_i32 = arith.constant 8 : i32
    %66 = arith.muli %65, %c8_i32 : i32
    %67 = tpu.iota {dimensions = array<i32: 0>} : vector<8x8xi32>
    %68 = vector.broadcast %66 : i32 to vector<8x8xi32>
    %69 = arith.addi %68, %67 : vector<8x8xi32>
    %70 = tpu.iota {dimensions = array<i32: 1>} : vector<8x8xi32>
    %71 = arith.cmpi sle, %70, %69 : vector<8x8xi32>
    %cst_28 = arith.constant 0.000000e+00 : f32
    %cst_29 = arith.constant -1.000000e+30 : f32
    %72 = vector.broadcast %cst_28 : f32 to vector<8x8xf32>
    %73 = vector.broadcast %cst_29 : f32 to vector<8x8xf32>
    %74 = arith.select %71, %72, %73 : vector<8x8xi1>, vector<8x8xf32>
    %75 = vector.extract_strided_slice %60 {offsets = [0, 0], sizes = [8, 8], strides = [1, 1]} : vector<8x32xbf16> to vector<8x8xbf16>
    %76 = vector.extract_strided_slice %62 {offsets = [0, 0], sizes = [8, 8], strides = [1, 1]} : vector<8x32xbf16> to vector<8x8xbf16>
    %cst_30 = arith.constant dense<0.000000e+00> : vector<8x8xf32>
    %77 = tpu.matmul %75, %76, %cst_30 {dimension_numbers = #tpu.dot_dimension_numbers<[1], [1], [0], [0], [0, 0, 1, 0], [], []>} : vector<8x8xbf16>, vector<8x8xbf16>, vector<8x8xf32> -> vector<8x8xf32>
    %78 = arith.addf %77, %74 : vector<8x8xf32>
    %cst_31 = arith.constant dense<0xFF800000> : vector<8xf32>
    %79 = vector.multi_reduction <maximumf>, %78, %cst_31 [1] : vector<8x8xf32> to vector<8xf32>
    %80 = vector.shape_cast %79 : vector<8xf32> to vector<8x1xf32>
    %81 = vector.broadcast %80 : vector<8x1xf32> to vector<8x8xf32>
    %82 = arith.subf %78, %81 : vector<8x8xf32>
    %83 = math.exp %82 : vector<8x8xf32>
    %cst_32 = arith.constant dense<0.000000e+00> : vector<8xf32>
    %84 = vector.multi_reduction <add>, %83, %cst_32 [1] : vector<8x8xf32> to vector<8xf32>
    %85 = vector.shape_cast %84 : vector<8xf32> to vector<8x1xf32>
    %86 = tpu.reciprocal %85 {approx = true} : vector<8x1xf32> -> vector<8x1xf32>
    %87 = vector.broadcast %86 : vector<8x1xf32> to vector<8x8xf32>
    %88 = arith.mulf %83, %87 : vector<8x8xf32>
    %89 = arith.truncf %88 : vector<8x8xf32> to vector<8x8xbf16>
    %90 = vector.extract_strided_slice %64 {offsets = [0, 0], sizes = [8, 8], strides = [1, 1]} : vector<8x32xbf16> to vector<8x8xbf16>
    %cst_33 = arith.constant dense<0.000000e+00> : vector<8x8xf32>
    %91 = tpu.matmul %89, %90, %cst_33 {dimension_numbers = #tpu.dot_dimension_numbers<[1], [0], [0], [1], [0, 0, 1, 1], [], []>} : vector<8x8xbf16>, vector<8x8xbf16>, vector<8x8xf32> -> vector<8x8xf32>
    %92 = arith.truncf %91 : vector<8x8xf32> to vector<8x8xbf16>
    %93 = vector.extract_strided_slice %60 {offsets = [0, 8], sizes = [8, 8], strides = [1, 1]} : vector<8x32xbf16> to vector<8x8xbf16>
    %94 = vector.extract_strided_slice %62 {offsets = [0, 8], sizes = [8, 8], strides = [1, 1]} : vector<8x32xbf16> to vector<8x8xbf16>
    %cst_34 = arith.constant dense<0.000000e+00> : vector<8x8xf32>
    %95 = tpu.matmul %93, %94, %cst_34 {dimension_numbers = #tpu.dot_dimension_numbers<[1], [1], [0], [0], [0, 0, 1, 0], [], []>} : vector<8x8xbf16>, vector<8x8xbf16>, vector<8x8xf32> -> vector<8x8xf32>
    %96 = arith.addf %95, %74 : vector<8x8xf32>
    %cst_35 = arith.constant dense<0xFF800000> : vector<8xf32>
    %97 = vector.multi_reduction <maximumf>, %96, %cst_35 [1] : vector<8x8xf32> to vector<8xf32>
    %98 = vector.shape_cast %97 : vector<8xf32> to vector<8x1xf32>
    %99 = vector.broadcast %98 : vector<8x1xf32> to vector<8x8xf32>
    %100 = arith.subf %96, %99 : vector<8x8xf32>
    %101 = math.exp %100 : vector<8x8xf32>
    %cst_36 = arith.constant dense<0.000000e+00> : vector<8xf32>
    %102 = vector.multi_reduction <add>, %101, %cst_36 [1] : vector<8x8xf32> to vector<8xf32>
    %103 = vector.shape_cast %102 : vector<8xf32> to vector<8x1xf32>
    %104 = tpu.reciprocal %103 {approx = true} : vector<8x1xf32> -> vector<8x1xf32>
    %105 = vector.broadcast %104 : vector<8x1xf32> to vector<8x8xf32>
    %106 = arith.mulf %101, %105 : vector<8x8xf32>
    %107 = arith.truncf %106 : vector<8x8xf32> to vector<8x8xbf16>
    %108 = vector.extract_strided_slice %64 {offsets = [0, 8], sizes = [8, 8], strides = [1, 1]} : vector<8x32xbf16> to vector<8x8xbf16>
    %cst_37 = arith.constant dense<0.000000e+00> : vector<8x8xf32>
    %109 = tpu.matmul %107, %108, %cst_37 {dimension_numbers = #tpu.dot_dimension_numbers<[1], [0], [0], [1], [0, 0, 1, 1], [], []>} : vector<8x8xbf16>, vector<8x8xbf16>, vector<8x8xf32> -> vector<8x8xf32>
    %110 = arith.truncf %109 : vector<8x8xf32> to vector<8x8xbf16>
    %111 = vector.extract_strided_slice %60 {offsets = [0, 16], sizes = [8, 8], strides = [1, 1]} : vector<8x32xbf16> to vector<8x8xbf16>
    %112 = vector.extract_strided_slice %62 {offsets = [0, 16], sizes = [8, 8], strides = [1, 1]} : vector<8x32xbf16> to vector<8x8xbf16>
    %cst_38 = arith.constant dense<0.000000e+00> : vector<8x8xf32>
    %113 = tpu.matmul %111, %112, %cst_38 {dimension_numbers = #tpu.dot_dimension_numbers<[1], [1], [0], [0], [0, 0, 1, 0], [], []>} : vector<8x8xbf16>, vector<8x8xbf16>, vector<8x8xf32> -> vector<8x8xf32>
    %114 = arith.addf %113, %74 : vector<8x8xf32>
    %cst_39 = arith.constant dense<0xFF800000> : vector<8xf32>
    %115 = vector.multi_reduction <maximumf>, %114, %cst_39 [1] : vector<8x8xf32> to vector<8xf32>
    %116 = vector.shape_cast %115 : vector<8xf32> to vector<8x1xf32>
    %117 = vector.broadcast %116 : vector<8x1xf32> to vector<8x8xf32>
    %118 = arith.subf %114, %117 : vector<8x8xf32>
    %119 = math.exp %118 : vector<8x8xf32>
    %cst_40 = arith.constant dense<0.000000e+00> : vector<8xf32>
    %120 = vector.multi_reduction <add>, %119, %cst_40 [1] : vector<8x8xf32> to vector<8xf32>
    %121 = vector.shape_cast %120 : vector<8xf32> to vector<8x1xf32>
    %122 = tpu.reciprocal %121 {approx = true} : vector<8x1xf32> -> vector<8x1xf32>
    %123 = vector.broadcast %122 : vector<8x1xf32> to vector<8x8xf32>
    %124 = arith.mulf %119, %123 : vector<8x8xf32>
    %125 = arith.truncf %124 : vector<8x8xf32> to vector<8x8xbf16>
    %126 = vector.extract_strided_slice %64 {offsets = [0, 16], sizes = [8, 8], strides = [1, 1]} : vector<8x32xbf16> to vector<8x8xbf16>
    %cst_41 = arith.constant dense<0.000000e+00> : vector<8x8xf32>
    %127 = tpu.matmul %125, %126, %cst_41 {dimension_numbers = #tpu.dot_dimension_numbers<[1], [0], [0], [1], [0, 0, 1, 1], [], []>} : vector<8x8xbf16>, vector<8x8xbf16>, vector<8x8xf32> -> vector<8x8xf32>
    %128 = arith.truncf %127 : vector<8x8xf32> to vector<8x8xbf16>
    %129 = vector.extract_strided_slice %60 {offsets = [0, 24], sizes = [8, 8], strides = [1, 1]} : vector<8x32xbf16> to vector<8x8xbf16>
    %130 = vector.extract_strided_slice %62 {offsets = [0, 24], sizes = [8, 8], strides = [1, 1]} : vector<8x32xbf16> to vector<8x8xbf16>
    %cst_42 = arith.constant dense<0.000000e+00> : vector<8x8xf32>
    %131 = tpu.matmul %129, %130, %cst_42 {dimension_numbers = #tpu.dot_dimension_numbers<[1], [1], [0], [0], [0, 0, 1, 0], [], []>} : vector<8x8xbf16>, vector<8x8xbf16>, vector<8x8xf32> -> vector<8x8xf32>
    %132 = arith.addf %131, %74 : vector<8x8xf32>
    %cst_43 = arith.constant dense<0xFF800000> : vector<8xf32>
    %133 = vector.multi_reduction <maximumf>, %132, %cst_43 [1] : vector<8x8xf32> to vector<8xf32>
    %134 = vector.shape_cast %133 : vector<8xf32> to vector<8x1xf32>
    %135 = vector.broadcast %134 : vector<8x1xf32> to vector<8x8xf32>
    %136 = arith.subf %132, %135 : vector<8x8xf32>
    %137 = math.exp %136 : vector<8x8xf32>
    %cst_44 = arith.constant dense<0.000000e+00> : vector<8xf32>
    %138 = vector.multi_reduction <add>, %137, %cst_44 [1] : vector<8x8xf32> to vector<8xf32>
    %139 = vector.shape_cast %138 : vector<8xf32> to vector<8x1xf32>
    %140 = tpu.reciprocal %139 {approx = true} : vector<8x1xf32> -> vector<8x1xf32>
    %141 = vector.broadcast %140 : vector<8x1xf32> to vector<8x8xf32>
    %142 = arith.mulf %137, %141 : vector<8x8xf32>
    %143 = arith.truncf %142 : vector<8x8xf32> to vector<8x8xbf16>
    %144 = vector.extract_strided_slice %64 {offsets = [0, 24], sizes = [8, 8], strides = [1, 1]} : vector<8x32xbf16> to vector<8x8xbf16>
    %cst_45 = arith.constant dense<0.000000e+00> : vector<8x8xf32>
    %145 = tpu.matmul %143, %144, %cst_45 {dimension_numbers = #tpu.dot_dimension_numbers<[1], [0], [0], [1], [0, 0, 1, 1], [], []>} : vector<8x8xbf16>, vector<8x8xbf16>, vector<8x8xf32> -> vector<8x8xf32>
    %146 = arith.truncf %145 : vector<8x8xf32> to vector<8x8xbf16>
    %147 = tpu.concatenate %92, %110, %128, %146 in 1 : vector<8x8xbf16>, vector<8x8xbf16>, vector<8x8xbf16>, vector<8x8xbf16> -> vector<8x32xbf16>
    %c0_46 = arith.constant 0 : index
    %c0_47 = arith.constant 0 : index
    %148 = vector.load %arg8[%c0_46, %c0_47] : memref<32x32xbf16, #tpu.memory_space<vmem>>, vector<32x32xbf16>
    %cst_48 = arith.constant dense<0.000000e+00> : vector<8x32xf32>
    %149 = tpu.matmul %147, %148, %cst_48 {dimension_numbers = #tpu.dot_dimension_numbers<[1], [0], [0], [1], [0, 0, 1, 1], [], []>} : vector<8x32xbf16>, vector<32x32xbf16>, vector<8x32xf32> -> vector<8x32xf32>
    %150 = arith.addf %2, %149 : vector<8x32xf32>
    %c0_49 = arith.constant 0 : index
    %c0_50 = arith.constant 0 : index
    %151 = vector.load %arg9[%c0_49, %c0_50] : memref<1x32xf32, #tpu.memory_space<vmem>>, vector<1x32xf32>
    %c0_51 = arith.constant 0 : index
    %c0_52 = arith.constant 0 : index
    %152 = vector.load %arg10[%c0_51, %c0_52] : memref<1x32xf32, #tpu.memory_space<vmem>>, vector<1x32xf32>
    %cst_53 = arith.constant dense<0.000000e+00> : vector<8xf32>
    %153 = vector.multi_reduction <add>, %150, %cst_53 [1] : vector<8x32xf32> to vector<8xf32>
    %154 = vector.shape_cast %153 : vector<8xf32> to vector<8x1xf32>
    %cst_54 = arith.constant 3.200000e+01 : f32
    %155 = vector.broadcast %cst_54 : f32 to vector<8x1xf32>
    %156 = arith.divf %154, %155 : vector<8x1xf32>
    %157 = vector.broadcast %156 : vector<8x1xf32> to vector<8x32xf32>
    %158 = arith.subf %150, %157 : vector<8x32xf32>
    %159 = arith.mulf %158, %158 : vector<8x32xf32>
    %cst_55 = arith.constant dense<0.000000e+00> : vector<8xf32>
    %160 = vector.multi_reduction <add>, %159, %cst_55 [1] : vector<8x32xf32> to vector<8xf32>
    %161 = vector.shape_cast %160 : vector<8xf32> to vector<8x1xf32>
    %cst_56 = arith.constant 3.200000e+01 : f32
    %162 = vector.broadcast %cst_56 : f32 to vector<8x1xf32>
    %163 = arith.divf %161, %162 : vector<8x1xf32>
    %164 = vector.broadcast %156 : vector<8x1xf32> to vector<8x32xf32>
    %165 = arith.subf %150, %164 : vector<8x32xf32>
    %cst_57 = arith.constant 9.99999974E-6 : f32
    %166 = vector.broadcast %cst_57 : f32 to vector<8x1xf32>
    %167 = arith.addf %163, %166 : vector<8x1xf32>
    %168 = math.rsqrt %167 : vector<8x1xf32>
    %169 = vector.broadcast %168 : vector<8x1xf32> to vector<8x32xf32>
    %170 = arith.mulf %165, %169 : vector<8x32xf32>
    %171 = vector.broadcast %151 : vector<1x32xf32> to vector<8x32xf32>
    %172 = arith.mulf %170, %171 : vector<8x32xf32>
    %173 = vector.broadcast %152 : vector<1x32xf32> to vector<8x32xf32>
    %174 = arith.addf %172, %173 : vector<8x32xf32>
    %175 = arith.truncf %174 : vector<8x32xf32> to vector<8x32xbf16>
    %c0_58 = arith.constant 0 : index
    %c0_59 = arith.constant 0 : index
    %176 = vector.load %arg11[%c0_58, %c0_59] : memref<32x128xbf16, #tpu.memory_space<vmem>>, vector<32x128xbf16>
    %cst_60 = arith.constant dense<0.000000e+00> : vector<8x128xf32>
    %177 = tpu.matmul %175, %176, %cst_60 {dimension_numbers = #tpu.dot_dimension_numbers<[1], [0], [0], [1], [0, 0, 1, 1], [], []>} : vector<8x32xbf16>, vector<32x128xbf16>, vector<8x128xf32> -> vector<8x128xf32>
    %178 = arith.mulf %177, %177 : vector<8x128xf32>
    %179 = arith.mulf %177, %178 : vector<8x128xf32>
    %cst_61 = arith.constant 4.471500e-02 : f32
    %180 = vector.broadcast %cst_61 : f32 to vector<8x128xf32>
    %181 = arith.mulf %180, %179 : vector<8x128xf32>
    %182 = arith.addf %177, %181 : vector<8x128xf32>
    %cst_62 = arith.constant 0.797884583 : f32
    %183 = vector.broadcast %cst_62 : f32 to vector<8x128xf32>
    %184 = arith.mulf %183, %182 : vector<8x128xf32>
    %185 = math.tanh %184 : vector<8x128xf32>
    %cst_63 = arith.constant 1.000000e+00 : f32
    %186 = vector.broadcast %cst_63 : f32 to vector<8x128xf32>
    %187 = arith.addf %186, %185 : vector<8x128xf32>
    %cst_64 = arith.constant 5.000000e-01 : f32
    %188 = vector.broadcast %cst_64 : f32 to vector<8x128xf32>
    %189 = arith.mulf %188, %187 : vector<8x128xf32>
    %190 = arith.mulf %177, %189 : vector<8x128xf32>
    %191 = arith.truncf %190 : vector<8x128xf32> to vector<8x128xbf16>
    %c0_65 = arith.constant 0 : index
    %c0_66 = arith.constant 0 : index
    %192 = vector.load %arg12[%c0_65, %c0_66] : memref<128x32xbf16, #tpu.memory_space<vmem>>, vector<128x32xbf16>
    %cst_67 = arith.constant dense<0.000000e+00> : vector<8x32xf32>
    %193 = tpu.matmul %191, %192, %cst_67 {dimension_numbers = #tpu.dot_dimension_numbers<[1], [0], [0], [1], [0, 0, 1, 1], [], []>} : vector<8x128xbf16>, vector<128x32xbf16>, vector<8x32xf32> -> vector<8x32xf32>
    %194 = arith.addf %150, %193 : vector<8x32xf32>
    %195 = arith.truncf %194 : vector<8x32xf32> to vector<8x32xbf16>
    %c0_68 = arith.constant 0 : index
    %c0_69 = arith.constant 0 : index
    %c0_70 = arith.constant 0 : index
    %196 = vector.load %arg13[%c0_68, %c0_69, %c0_70] : memref<1x8x32xbf16, #tpu.memory_space<vmem>>, vector<1x8x32xbf16>
    %197 = vector.shape_cast %196 : vector<1x8x32xbf16> to vector<8x32xbf16>
    %198 = vector.shape_cast %195 : vector<8x32xbf16> to vector<1x8x32xbf16>
    tpu.vector_store %arg13[%c0_68, %c0_69, %c0_70], %198 {strides = array<i32>} : memref<1x8x32xbf16, #tpu.memory_space<vmem>>, vector<1x8x32xbf16>,
    return
  }
  func.func @transform_0(%arg0: i32, %arg1: i32) -> (i32, i32, i32) {
    %c0_i32 = arith.constant 0 : i32
    %c0_i32_0 = arith.constant 0 : i32
    return %arg0, %arg1, %c0_i32 : i32, i32, i32
  }
  func.func @transform_1(%arg0: i32, %arg1: i32) -> (i32, i32, i32) {
    %c0_i32 = arith.constant 0 : i32
    %c0_i32_0 = arith.constant 0 : i32
    %c0_i32_1 = arith.constant 0 : i32
    return %arg0, %c0_i32, %c0_i32_0 : i32, i32, i32
  }
  func.func @transform_2(%arg0: i32, %arg1: i32) -> (i32, i32) {
    %c0_i32 = arith.constant 0 : i32
    %c0_i32_0 = arith.constant 0 : i32
    %c0_i32_1 = arith.constant 0 : i32
    return %c0_i32, %c0_i32_0 : i32, i32
  }
  func.func @transform_3(%arg0: i32, %arg1: i32) -> (i32, i32) {
    %c0_i32 = arith.constant 0 : i32
    %c0_i32_0 = arith.constant 0 : i32
    %c0_i32_1 = arith.constant 0 : i32
    return %c0_i32, %c0_i32_0 : i32, i32
  }
  func.func @transform_4(%arg0: i32, %arg1: i32) -> (i32, i32) {
    %c0_i32 = arith.constant 0 : i32
    %c0_i32_0 = arith.constant 0 : i32
    %c0_i32_1 = arith.constant 0 : i32
    return %c0_i32, %c0_i32_0 : i32, i32
  }
  func.func @transform_5(%arg0: i32, %arg1: i32) -> (i32, i32) {
    %c0_i32 = arith.constant 0 : i32
    %c0_i32_0 = arith.constant 0 : i32
    %c0_i32_1 = arith.constant 0 : i32
    return %c0_i32, %c0_i32_0 : i32, i32
  }
  func.func @transform_6(%arg0: i32, %arg1: i32) -> (i32, i32) {
    %c0_i32 = arith.constant 0 : i32
    %c0_i32_0 = arith.constant 0 : i32
    %c0_i32_1 = arith.constant 0 : i32
    return %c0_i32, %c0_i32_0 : i32, i32
  }
  func.func @transform_7(%arg0: i32, %arg1: i32) -> (i32, i32) {
    %c0_i32 = arith.constant 0 : i32
    %c0_i32_0 = arith.constant 0 : i32
    %c0_i32_1 = arith.constant 0 : i32
    return %c0_i32, %c0_i32_0 : i32, i32
  }
  func.func @transform_8(%arg0: i32, %arg1: i32) -> (i32, i32) {
    %c0_i32 = arith.constant 0 : i32
    %c0_i32_0 = arith.constant 0 : i32
    %c0_i32_1 = arith.constant 0 : i32
    return %c0_i32, %c0_i32_0 : i32, i32
  }
  func.func @transform_9(%arg0: i32, %arg1: i32) -> (i32, i32) {
    %c0_i32 = arith.constant 0 : i32
    %c0_i32_0 = arith.constant 0 : i32
    %c0_i32_1 = arith.constant 0 : i32
    return %c0_i32, %c0_i32_0 : i32, i32
  }
  func.func @transform_10(%arg0: i32, %arg1: i32) -> (i32, i32) {
    %c0_i32 = arith.constant 0 : i32
    %c0_i32_0 = arith.constant 0 : i32
    %c0_i32_1 = arith.constant 0 : i32
    return %c0_i32, %c0_i32_0 : i32, i32
  }
  func.func @transform_11(%arg0: i32, %arg1: i32) -> (i32, i32, i32) {
    %c0_i32 = arith.constant 0 : i32
    %c0_i32_0 = arith.constant 0 : i32
    return %arg0, %arg1, %c0_i32 : i32, i32, i32
  }
}

</mosaic_0001>

<bundles_post_ra>
// kernel: tpu_custom_call.1
= control target key start
LH: loop header
LB: loop body
LE: loop exit
PB: predicated region body
PF: predicated region fallthrough
CT: control target
= control target key end

     0   :  { %s2155_s0 = inlined_call_operand.vmem [shape: bf16[2,8,32], index: 0, kind: input, shape index: {}]   ;;  %s2156_s1 = inlined_call_operand.vmem [shape: bf16[2,8,32], index: 1, kind: input, shape index: {}]   ;;  %s2157_s2 = inlined_call_operand.vmem [shape: f32[1,32], index: 2, kind: input, shape index: {}]   ;;  %s2158_s3 = inlined_call_operand.vmem [shape: f32[1,32], index: 3, kind: input, shape index: {}]   ;;  %s2159_s4 = inlined_call_operand.vmem [shape: bf16[32,32], index: 4, kind: input, shape index: {}]   ;;  %s2160_s5 = inlined_call_operand.vmem [shape: bf16[32,64], index: 5, kind: input, shape index: {}]   ;;  %s2161_s6 = inlined_call_operand.vmem [shape: bf16[32,32], index: 6, kind: input, shape index: {}]   ;;  %s2162_s7 = inlined_call_operand.vmem [shape: f32[1,32], index: 7, kind: input, shape index: {}]   ;;  %s2163_s8 = inlined_call_operand.vmem [shape: f32[1,32], index: 8, kind: input, shape index: {}]   ;;  %s2164_s9 = inlined_call_operand.vmem [shape: bf16[32,128], index: 9, kind: input, shape index: {}]   ;;  %s2165_s10 = inlined_call_operand.vmem [shape: bf16[128,32], index: 10, kind: input, shape index: {}]   ;;  %s2166_s11 = inlined_call_operand.hbm [shape: bf16[2,8,32], index: 11, kind: output, shape index: {}]  }
   0x1   :  { %2167 = sst [smem:[#allocation5_spill]] %s2155_s0 }
   0x2   :  { %2168 = sst [smem:[#allocation6_spill]] %s2156_s1 }
   0x3   :  { %16 = vsyncpa [#allocation3], 0 }
   0x4   :  { %18 = vsyncpa [#allocation3 + $0x1], 0  ;;  %s1875_s17 = smov 0   ;;  %s1877_s18 = smov 0  }
   0x5   :  { %s1879_s19 = smov 0   ;;  %s1881_s20 = smov 0  }
   0x6   :  { %s1883_s21 = smov 0   ;;  %s1885_s22 = smov 0  }
   0x7 LB: > { %s1432_s23 = sadd.s32 4294967295, %s1799_s22   ;;  %s1433_s24 = sadd.s32 4294967294, %s1799_s22   ;;  %s1799_s22 = sphi %s1885_s22, %s24_s22   ;;  %s1795_s21 = sphi %s1883_s21, %s2177_s21   ;;  %s1791_s20 = sphi %s1881_s20, %s2176_s20   ;;  %s1787_s19 = sphi %s1879_s19, %s2175_s19   ;;  %s1783_s18 = sphi %s1877_s18, %s2174_s18   ;;  %s1779_s17 = sphi %s1875_s17, %s2173_s17  }
   0x8   : > { %s36_s25 = sadd.s32 1, %s1795_s21  ;;  %s288_s26 = sadd.s32 1, %s1787_s19 }
   0x9   : > { %p38_p0 = scmp.ge.s32.totalorder %s36_s25, 2  ;;  %p298_p1 = scmp.ne.s32.totalorder %s1787_s19, %s1783_s18 }
   0xa   : > { %p299_p2 = scmp.eq.s32.totalorder %s1432_s23, 1  ;;  %p304_p3 = scmp.ne.s32.totalorder %s1783_s18, %s1779_s17 }
   0xb   : > { %s2179_s25 = smov (%p38_p0, %s36_s25), 0  ;;  %p305_p5 = scmp.eq.s32.totalorder %s1433_s24, 1 }
   0xc   : > { %p1915_p4 = por %p299_p2, %p298_p1  ;;  %s283_s28 = ssub.s32 %s1795_s21, %s2179_s25 }
   0xd   : > { %p1436_p6 = scmp.ge.s32.totalorder %s1799_s22, 1  ;;  %p286_p7 = scmp.eq.s32.totalorder %s283_s28, 0 }
   0xe   : > { %p1922_p8 = por %p305_p5, %p304_p3  ;;  %p367_p9 = scmp.lt.s32.totalorder %s1799_s22, 3 }
   0xf   : > { %s1928_s30 = scalar_select %p286_p7, %s1787_s19, %s288_s26  }
  0x10   : > { %p368_p10 = pnand %p1436_p6, %p367_p9 }
  0x11   : > { %p413_p11 = scmp.lt.s32.totalorder (!%p368_p10), %s1791_s20, 1  ;;  %vm431_vm0 = vcmask (!%p368_p10), 261120   ;;  %s2171_s0 = sld [smem:[#allocation5_spill]] (!%p368_p10)  ;;  %v1681_v16 = vld [vmem:[%s2159_s4] sm:$0xff] (!%p368_p10)   ;;  %v1801_v17 = vmov (!%p368_p10), 0.0   ;;  %v1682_v18 = vld [vmem:[%s2159_s4 + $0x8] sm:$0xff] (!%p368_p10)   ;;  %v598_v59 = vlaneseq (!%p368_p10) }
  0x12   : > { %371 = sbr.rel (%p368_p10) target bundleno = 2609 (0xa31), region = 64  ;;  %s2172_s1 = sld [smem:[#allocation6_spill]] (!%p368_p10)  ;;  %1513 = vmatprep.subr.bf16.mxu1 (!%p368_p10), %v1801_v17  ;;  %1541 = vmatprep.subr.bf16.mxu0 (!%p368_p10), %v1801_v17  ;;  %vm1802_vm1 = vmmov (!%p368_p10), 0   ;;  %v1440_v26 = vld [vmem:[%s2157_s2] ss:$0 sm:$0xff] (!%p368_p10)  ;;  %v1684_v36 = vld [vmem:[%s2160_s5 + $0x8] sm:$0xff] (!%p368_p10)  }
  0x13   : > { %1514 = vmatpush3.bf16.msra.mxu1 (!%p368_p10), %v1681_v16  ;;  %1517 = vmatprep.mubr.msk.bf16.mxu1 (!%p368_p10), %vm1802_vm1, %v1801_v17  ;;  %v1441_v28 = vld [vmem:[%s2158_s3] ss:$0 sm:$0xff] (!%p368_p10)  ;;  %s1803_s14 = smov (!%p368_p10), 120   ;;  %vm606_vm2 = vcmask (!%p368_p10), 64512   ;;  %s1804_s15 = smov (!%p368_p10), 112   ;;  %v599_v60 = vshrl.u32 (!%p368_p10), %v598_v59, 7 }
  0x14   : > { %1515 = vmatprep.subr.bf16.mxu1 (!%p368_p10), %v1801_v17  ;;  %1543 = vmatprep.mubr.msk.bf16.mxu0 (!%p368_p10), %vm1802_vm1, %v1801_v17  ;;  %v1683_v33 = vld [vmem:[%s2160_s5] sm:$0xff] (!%p368_p10)   ;;  %v603_v61 = vand.u32 (!%p368_p10), 127, %v598_v59  ;;  %v1806_v62 = vmov (!%p368_p10), -1e+30   ;;  %s1807_s23 = smov (!%p368_p10), 88   ;;  %s1808_s24 = smov (!%p368_p10), 80  }
  0x15   : > { %s1810_s26 = smov (!%p368_p10), 72   ;;  %vm671_vm4 = vcmask (!%p368_p10), 1043456   ;;  %vm1062_vm5 = vcmask (!%p368_p10), 130048   ;;  %vm1065_vm6 = vcmask (!%p368_p10), 195584   ;;  %vm1332_vm7 = vcmask (!%p368_p10), 257024  }
  0x16   : > { %vm604_vm3 = vcmp.le.s32.totalorder (!%p368_p10), %v603_v61, %v599_v60 }
  0x17   : > { %1516 = vmatpush3.bf16.msra.mxu1 (!%p368_p10), %v1682_v18  ;;  %v605_v63 = vsel (!%p368_p10), %vm604_vm3, 0.0, %v1806_v62 }
  0x18   : > { %1521 = vmatprep.subr.bf16.mxu1 (!%p368_p10), %v1801_v17 }
  0x19   : > { %s414_s12 = scalar_select %p413_p11, %s1791_s20, 1 }
  0x1b   : > { %s1438_s13 = sshll.u32 %s414_s12, 2 }
  0x1c   : > { %s419_s16 = scalar_lea.vmem %s2171_s0, %s1438_s13  ;;  %s423_s28 = scalar_lea.vmem %s2172_s1, %s1438_s13 }
  0x1d   : > { %v425_v0 = vld [vmem:[%s419_s16] sm:$0xf]  ;;  %s1805_s16 = smov 104  }
  0x1e   : > { %v427_v1 = vld [vmem:[%s423_s28] sm:$0xf]  ;;  %v1938_v2 = vunpack.c.l.bf16 %v425_v0  ;;  %s1809_s28 = smov 96  }
  0x1f   : > { %v428_v3 = vunpack.c.l.bf16 %v427_v1 }
  0x20   : > { %v432_v4 = vsel %vm431_vm0, %v1938_v2, 0.0 }
  0x21   : > { %v461_v5 = vsel %vm431_vm0, %v428_v3, 0.0  ;;  %433 = vadd.xlane.f32.xlu0 %v432_v4 }
  0x25   : > { %462 = vadd.xlane.f32.xlu0 %v461_v5 }
  0xae   : > { %v434_v6 = vpop.xlane.xlu0 %433 }
  0xaf   : > { %v436_v7 = vmul.f32 0.03125, %v434_v6 }
  0xb1   : > { %v437_v8 = vsub.f32 %v1938_v2, %v436_v7 }
  0xb2   : > { %v463_v9 = vpop.xlane.xlu0 %462 }
  0xb3   : > { %v464_v10 = vmul.f32 0.03125, %v463_v9  ;;  %v438_v11 = vmul.f32 %v437_v8, %v437_v8 }
  0xb5   : > { %v465_v12 = vsub.f32 %v428_v3, %v464_v10  ;;  %v439_v13 = vsel %vm431_vm0, %v438_v11, 0.0 }
  0xb6   : > { %440 = vadd.xlane.f32.xlu1 %v439_v13 }
  0xb7   : > { %v466_v14 = vmul.f32 %v465_v12, %v465_v12 }
  0xb9   : > { %v467_v15 = vsel %vm431_vm0, %v466_v14, 0.0 }
  0xba   : > { %468 = vadd.xlane.f32.xlu1 %v467_v15 }
 0x143   : > { %v441_v19 = vpop.xlane.xlu1 %440 }
 0x144   : > { %v442_v20 = vmul.f32 0.03125, %v441_v19 }
 0x146   : > { %v443_v21 = vadd.f32 1e-05, %v442_v20 }
 0x147   : > { %v469_v22 = vpop.xlane.xlu1 %468 }
 0x148   : > { %1697 = vrsqrt.f32 %v443_v21  ;;  %v470_v23 = vmul.f32 0.03125, %v469_v22 }
 0x14a   : > { %v471_v24 = vadd.f32 1e-05, %v470_v23 }
 0x14c   : > { %1699 = vrsqrt.f32 %v471_v24 }
 0x152   : > { %v1698_v25 = vpop.eup %1697 }
 0x153   : > { %v445_v27 = vmul.f32 %v1698_v25, %v437_v8 }
 0x155   : > { %v452_v29 = vmul.f32 %v1440_v26, %v445_v27 }
 0x156   : > { %v1700_v30 = vpop.eup %1699 }
 0x157   : > { %v473_v31 = vmul.f32 %v1700_v30, %v465_v12  ;;  %v459_v32 = vadd.f32 %v1441_v28, %v452_v29 }
 0x159   : > { %v460_v34 = vpack.c.bf16 %v459_v32, %v459_v32  ;;  %v474_v35 = vmul.f32 %v1440_v26, %v473_v31 }
 0x15b   : > { %1518 = vmatmul.mubr.msk.bf16.vlgmr.msra.gmra.mrb[0].mxu1 %vm431_vm0, %v460_v34  ;;  %v475_v37 = vadd.f32 %v1441_v28, %v474_v35 }
 0x15c   : > { %1522 = vmatpush3.bf16.msra.mxu1 %v1683_v33  ;;  %1525 = vmatprep.mubr.msk.bf16.mxu1 %vm1802_vm1, %v1801_v17 }
 0x15d   : > { %1523 = vmatprep.subr.bf16.mxu1 %v1801_v17  ;;  %v476_v38 = vpack.c.bf16 %v475_v37, %v475_v37 }
 0x160   : > { %1524 = vmatpush3.bf16.msra.mxu1 %v1684_v36 }
 0x161   : > { %1529 = vmatprep.subr.bf16.mxu1 %v1801_v17 }
 0x163   : > { %1526 = vmatmul.mubr.msk.bf16.vlgmr.msra.gmra.mrb[4].mxu1 %vm431_vm0, %v476_v38 }
 0x164   : > { %1531 = vmatprep.mubr.msk.bf16.mxu1 %vm1802_vm1, %v1801_v17 }
 0x22e   : > { %v530_v39 = vpop.f32.mrb[0].mxu1 }
 0x22f   : > { %v595_v40 = vpack.c.bf16 %v530_v39, %v530_v39  ;;  %v1519_v41 = vpop.f32.mrb[1].mxu1 }
 0x230   : > { %v533_v42 = vpop.f32.mrb[2].mxu1 }
 0x231   : > { %v1520_v43 = vpop.f32.mrb[3].mxu1  ;;  %717 = vrot.lane.b32.xlu1 %v595_v40, %s1803_s14 }
 0x236   : > { %v589_v44 = vpop.f32.mrb[4].mxu1 }
 0x237   : > { %v1980_v45 = vpack.c.bf16 %v589_v44, %v589_v44  ;;  %v1527_v46 = vpop.f32.mrb[5].mxu1 }
 0x238   : > { %v592_v47 = vpop.f32.mrb[6].mxu1 }
 0x239   : > { %830 = vrot.lane.b32.xlu1 %v1980_v45, %s1804_s15  ;;  %719 = vrot.lane.b32.xlu0 %v1980_v45, %s1803_s14  ;;  %v1528_v48 = vpop.f32.mrb[7].mxu1  ;;  %v611_v49 = vsel %vm606_vm2, %v1980_v45, 0 }
 0x23a   : > { %1530 = vmatpush3.bf16.xpose.msra.mxu1 %v611_v49 }
 0x23b   : > { %1535 = vmatprep.subr.bf16.mxu1 %v1801_v17 }
 0x23d   : > { %828 = vrot.lane.b32.xlu1 %v595_v40, %s1804_s15  ;;  %941 = vrot.lane.b32.xlu0 %v1980_v45, %s1805_s16 }
 0x241   : > { %939 = vrot.lane.b32.xlu1 %v595_v40, %s1805_s16  ;;  %1532 = vmatmul.mubr.msk.bf16.vlgmr.msra.gmra.mrb[8].mxu1 %vm606_vm2, %v595_v40  ;;  %s1811_s16 = smov 8  }
 0x242   : > { %1537 = vmatprep.mubr.msk.bf16.mxu1 %vm1802_vm1, %v1801_v17 }
 0x2a3   : > { %v718_v52 = vpop.permute.xlu1 %717 }
 0x2ab   : > { %v720_v50 = vpop.permute.xlu0 %719  ;;  %v831_v53 = vpop.permute.xlu1 %830 }
 0x2ac   : > { %v725_v51 = vsel %vm606_vm2, %v720_v50, 0  ;;  %v836_v54 = vsel %vm606_vm2, %v831_v53, 0 }
 0x2ad   : > { %1542 = vmatpush3.bf16.xpose.msra.mxu0 %v725_v51 }
 0x2ae   : > { %1553 = vmatprep.subr.bf16.mxu0 %v1801_v17 }
 0x2af   : > { %v942_v55 = vpop.permute.xlu0 %941  ;;  %v829_v56 = vpop.permute.xlu1 %828 }
 0x2b0   : > { %v947_v57 = vsel %vm606_vm2, %v942_v55, 0 }
 0x2b3   : > { %v940_v58 = vpop.permute.xlu1 %939 }
 0x2b4   : > { %1544 = vmatmul.mubr.msk.bf16.vlgmr.msra.gmra.mrb[0].mxu0 %vm606_vm2, %v718_v52 }
 0x2b5   : > { %1554 = vmatpush3.bf16.xpose.msra.mxu0 %v836_v54  ;;  %1555 = vmatprep.mubr.msk.bf16.mxu0 %vm1802_vm1, %v1801_v17 }
 0x2b6   : > { %1565 = vmatprep.subr.bf16.mxu0 %v1801_v17 }
 0x2bc   : > { %1556 = vmatmul.mubr.msk.bf16.vlgmr.msra.gmra.mrb[4].mxu0 %vm606_vm2, %v829_v56 }
 0x2bd   : > { %1566 = vmatpush3.bf16.xpose.msra.mxu0 %v947_v57  ;;  %1567 = vmatprep.mubr.msk.bf16.mxu0 %vm1802_vm1, %v1801_v17 }
 0x2be   : > { %1577 = vmatprep.subr.bf16.mxu0 %v1801_v17 }
 0x2c4   : > { %1568 = vmatmul.mubr.msk.bf16.vlgmr.msra.gmra.mrb[8].mxu0 %vm606_vm2, %v940_v58 }
 0x2c5   : > { %1581 = vmatprep.mubr.msk.bf16.mxu0 %vm1802_vm1, %v1801_v17 }
 0x314   : > { %v647_v0 = vpop.f32.mrb[8].mxu1 }
 0x315   : > { %v648_v1 = vadd.f32 %v647_v0, %v605_v63  ;;  %v1533_v3 = vpop.f32.mrb[9].mxu1 }
 0x316   : > { %v650_v4 = vpop.f32.mrb[10].mxu1 }
 0x317   : > { %v1534_v5 = vpop.f32.mrb[11].mxu1  ;;  %v653_v6 = vsel %vm606_vm2, %v648_v1, -inf }
 0x318   : > { %654 = vmax.xlane.f32.xlu0 %v653_v6 }
 0x387   : > { %v761_v7 = vpop.f32.mrb[0].mxu0 }
 0x388   : > { %v762_v8 = vadd.f32 %v761_v7, %v605_v63  ;;  %v1545_v9 = vpop.f32.mrb[1].mxu0 }
 0x389   : > { %v764_v10 = vpop.f32.mrb[2].mxu0 }
 0x38a   : > { %v1546_v11 = vpop.f32.mrb[3].mxu0  ;;  %v767_v12 = vsel %vm606_vm2, %v762_v8, -inf }
 0x38b   : > { %768 = vmax.xlane.f32.xlu1 %v767_v12  ;;  %v1685_v11 = vld [vmem:[%s2161_s6] sm:$0xff]  }
 0x38c   : > { %1578 = vmatpush3.bf16.msra.mxu0 %v1685_v11 }
 0x38d   : > { %1579 = vmatprep.subr.bf16.mxu0 %v1801_v17 }
 0x38f   : > { %v872_v13 = vpop.f32.mrb[4].mxu0 }
 0x390   : > { %v873_v14 = vadd.f32 %v872_v13, %v605_v63  ;;  %v1557_v15 = vpop.f32.mrb[5].mxu0  ;;  %v1686_v13 = vld [vmem:[%s2161_s6 + $0x8] sm:$0xff]  }
 0x391   : > { %v875_v16 = vpop.f32.mrb[6].mxu0  ;;  %1580 = vmatpush3.bf16.msra.mxu0 %v1686_v13 }
 0x392   : > { %v1558_v18 = vpop.f32.mrb[7].mxu0  ;;  %v878_v19 = vsel %vm606_vm2, %v873_v14, -inf  ;;  %1593 = vmatprep.subr.bf16.mxu0 %v1801_v17 }
 0x393   : > { %879 = vmax.xlane.f32.xlu0 %v878_v19 }
 0x397   : > { %v983_v20 = vpop.f32.mrb[8].mxu0 }
 0x398   : > { %v984_v21 = vadd.f32 %v983_v20, %v605_v63  ;;  %v1569_v22 = vpop.f32.mrb[9].mxu0 }
 0x399   : > { %v986_v23 = vpop.f32.mrb[10].mxu0 }
 0x39a   : > { %v1570_v24 = vpop.f32.mrb[11].mxu0  ;;  %v989_v25 = vsel %vm606_vm2, %v984_v21, -inf }
 0x39b   : > { %990 = vmax.xlane.f32.xlu0 %v989_v25 }
 0x3a5   : > { %v655_v26 = vpop.xlane.xlu0 %654 }
 0x3a6   : > { %v656_v27 = vsub.f32 %v648_v1, %v655_v26 }
 0x3a8   : > { %v657_v28 = vmul.f32 1.442695, %v656_v27 }
 0x3aa   : > { %1701 = vpow2.f32 %v657_v28 }
 0x3b4   : > { %v1702_v29 = vpop.eup %1701 }
 0x3b5   : > { %v659_v30 = vsel %vm606_vm2, %v1702_v29, 0.0 }
 0x3b6   : > { %660 = vadd.xlane.f32.xlu0 %v659_v30 }
 0x418   : > { %v769_v31 = vpop.xlane.xlu1 %768 }
 0x419   : > { %v770_v32 = vsub.f32 %v762_v8, %v769_v31 }
 0x41b   : > { %v771_v33 = vmul.f32 1.442695, %v770_v32 }
 0x41d   : > { %1703 = vpow2.f32 %v771_v33 }
 0x420   : > { %v880_v34 = vpop.xlane.xlu0 %879 }
 0x421   : > { %v881_v35 = vsub.f32 %v873_v14, %v880_v34 }
 0x423   : > { %v882_v36 = vmul.f32 1.442695, %v881_v35 }
 0x425   : > { %1705 = vpow2.f32 %v882_v36 }
 0x427   : > { %v1704_v37 = vpop.eup %1703 }
 0x428   : > { %v773_v38 = vsel %vm606_vm2, %v1704_v37, 0.0  ;;  %v991_v41 = vpop.xlane.xlu0 %990 }
 0x429   : > { %774 = vadd.xlane.f32.xlu1 %v773_v38  ;;  %v992_v42 = vsub.f32 %v984_v21, %v991_v41 }
 0x42b   : > { %v993_v43 = vmul.f32 1.442695, %v992_v42 }
 0x42d   : > { %1707 = vpow2.f32 %v993_v43 }
 0x42f   : > { %v1706_v39 = vpop.eup %1705 }
 0x430   : > { %v884_v40 = vsel %vm606_vm2, %v1706_v39, 0.0 }
 0x431   : > { %885 = vadd.xlane.f32.xlu0 %v884_v40 }
 0x437   : > { %v1708_v44 = vpop.eup %1707 }
 0x438   : > { %v995_v46 = vsel %vm606_vm2, %v1708_v44, 0.0 }
 0x43a   : > { %779 = vrot.lane.b32.xlu1 %v1980_v45, %s1807_s23  ;;  %s1812_s23 = smov 16  }
 0x43e   : > { %890 = vrot.lane.b32.xlu1 %v1980_v45, %s1808_s24  ;;  %s1813_s24 = smov 24  }
 0x443   : > { %v661_v47 = vpop.xlane.xlu0 %660 }
 0x444   : > { %1709 = vrcp.f32 %v661_v47 }
 0x447   : > { %666 = vrot.lane.b32.xlu0 %v1980_v45, %s1809_s28 }
 0x44e   : > { %v1710_v49 = vpop.eup %1709 }
 0x44f   : > { %v663_v51 = vmul.f32 %v1710_v49, %v1702_v29  ;;  %v1689_v49 = vld [vmem:[%s2165_s10] sm:$0xff]  }
 0x451   : > { %v664_v55 = vpack.c.bf16 %v663_v51, %v663_v51 }
 0x462   : > { %996 = vadd.xlane.f32.xlu1 %v995_v46 }
 0x473   : > { %1001 = vrot.lane.b32.xlu1 %v1980_v45, %s1810_s26 }
 0x4b6   : > { %v775_v48 = vpop.xlane.xlu1 %774 }
 0x4b7   : > { %1711 = vrcp.f32 %v775_v48  ;;  %v1688_v48 = vld [vmem:[%s2164_s9 + $0x8] sm:$0xff]  }
 0x4ba   : > { %v780_v54 = vpop.permute.xlu1 %779 }
 0x4bb   : > { %v785_v45 = vsel %vm671_vm4, %v780_v54, 0  ;;  %v1459_v54 = vld [vmem:[%s2162_s7] ss:$0 sm:$0xff] }
 0x4be   : > { %v886_v50 = vpop.xlane.xlu0 %885  ;;  %v891_v58 = vpop.permute.xlu1 %890 }
 0x4bf   : > { %1713 = vrcp.f32 %v886_v50  ;;  %v896_v61 = vsel %vm671_vm4, %v891_v58, 0 }
 0x4c1   : > { %v1712_v56 = vpop.eup %1711 }
 0x4c2   : > { %v667_v52 = vpop.permute.xlu0 %666  ;;  %v777_v57 = vmul.f32 %v1712_v56, %v1704_v37  ;;  %v1460_v56 = vld [vmem:[%s2163_s8] ss:$0 sm:$0xff] }
 0x4c3   : > { %v673_v53 = vsel %vm671_vm4, %v667_v52, 0 }
 0x4c4   : > { %1536 = vmatpush3.bf16.msra.mxu1 %v673_v53  ;;  %v778_v59 = vpack.c.bf16 %v777_v57, %v777_v57 }
 0x4c5   : > { %1547 = vmatprep.subr.bf16.mxu1 %v1801_v17 }
 0x4c7   : > { %1538 = vmatmul.mubr.msk.bf16.vlgmr.msra.gmra.mrb[12].mxu1 %vm606_vm2, %v664_v55 }
 0x4c8   : > { %1548 = vmatpush3.bf16.msra.mxu1 %v785_v45  ;;  %1549 = vmatprep.mubr.msk.bf16.mxu1 %vm1802_vm1, %v1801_v17 }
 0x4c9   : > { %1559 = vmatprep.subr.bf16.mxu1 %v1801_v17  ;;  %v1714_v60 = vpop.eup %1713 }
 0x4ca   : > { %v888_v62 = vmul.f32 %v1714_v60, %v1706_v39  ;;  %v1691_v60 = vld [vmem:[%s2165_s10 + $0x10] sm:$0xff]  }
 0x4cc   : > { %v889_v63 = vpack.c.bf16 %v888_v62, %v888_v62  ;;  %v1693_v62 = vld [vmem:[%s2165_s10 + $0x20] sm:$0xff]  }
 0x4cf   : > { %1550 = vmatmul.mubr.msk.bf16.vlgmr.msra.gmra.mrb[16].mxu1 %vm606_vm2, %v778_v59  ;;  %v1690_v59 = vld [vmem:[%s2165_s10 + $0x8] sm:$0xff]  }
 0x4d0   : > { %1560 = vmatpush3.bf16.msra.mxu1 %v896_v61  ;;  %1561 = vmatprep.mubr.msk.bf16.mxu1 %vm1802_vm1, %v1801_v17  ;;  %v1692_v61 = vld [vmem:[%s2165_s10 + $0x18] sm:$0xff]  }
 0x4d1   : > { %1571 = vmatprep.subr.bf16.mxu1 %v1801_v17 }
 0x4d7   : > { %1562 = vmatmul.mubr.msk.bf16.vlgmr.msra.gmra.mrb[20].mxu1 %vm606_vm2, %v889_v63  ;;  %v1694_v63 = vld [vmem:[%s2165_s10 + $0x28] sm:$0xff]  }
 0x4d8   : > { %1573 = vmatprep.mubr.msk.bf16.mxu1 %vm1802_vm1, %v1801_v17 }
 0x4ef   : > { %v997_v0 = vpop.xlane.xlu1 %996 }
 0x4f0   : > { %1715 = vrcp.f32 %v997_v0  ;;  %v1695_v0 = vld [vmem:[%s2165_s10 + $0x30] sm:$0xff]  }
 0x4f3   : > { %v1002_v1 = vpop.permute.xlu1 %1001 }
 0x4f4   : > { %v1007_v3 = vsel %vm671_vm4, %v1002_v1, 0  ;;  %v1696_v1 = vld [vmem:[%s2165_s10 + $0x38] sm:$0xff]  }
 0x4f5   : > { %1572 = vmatpush3.bf16.msra.mxu1 %v1007_v3 }
 0x4f6   : > { %1585 = vmatprep.subr.bf16.mxu1 %v1801_v17 }
 0x4fa   : > { %v1716_v4 = vpop.eup %1715 }
 0x4fb   : > { %v999_v5 = vmul.f32 %v1716_v4, %v1708_v44 }
 0x4fd   : > { %v1000_v6 = vpack.c.bf16 %v999_v5, %v999_v5 }
 0x4ff   : > { %1574 = vmatmul.mubr.msk.bf16.vlgmr.msra.gmra.mrb[24].mxu1 %vm606_vm2, %v1000_v6 }
 0x500   : > { %1589 = vmatprep.mubr.msk.bf16.mxu1 %vm1802_vm1, %v1801_v17 }
 0x59a   : > { %v709_v7 = vpop.f32.mrb[12].mxu1 }
 0x59b   : > { %v1539_v8 = vpop.f32.mrb[13].mxu1  ;;  %v715_v30 = vpack.c.bf16 %v709_v7, %v709_v7 }
 0x59c   : > { %v712_v9 = vpop.f32.mrb[14].mxu1 }
 0x59d   : > { %v1540_v10 = vpop.f32.mrb[15].mxu1 }
 0x5a2   : > { %v821_v12 = vpop.f32.mrb[16].mxu1 }
 0x5a3   : > { %v827_v14 = vpack.c.bf16 %v821_v12, %v821_v12  ;;  %v1551_v15 = vpop.f32.mrb[17].mxu1 }
 0x5a4   : > { %v824_v16 = vpop.f32.mrb[18].mxu1 }
 0x5a5   : > { %1051 = vrot.lane.b32.xlu0 %v827_v14, %s1811_s16  ;;  %v1552_v18 = vpop.f32.mrb[19].mxu1  ;;  %s410_s16 = sand.u32 1, %s1783_s18  }
 0x5aa   : > { %v932_v19 = vpop.f32.mrb[20].mxu1 }
 0x5ab   : > { %v938_v20 = vpack.c.bf16 %v932_v19, %v932_v19  ;;  %v1563_v21 = vpop.f32.mrb[21].mxu1 }
 0x5ac   : > { %v935_v22 = vpop.f32.mrb[22].mxu1 }
 0x5ad   : > { %1054 = vrot.lane.b32.xlu1 %v938_v20, %s1812_s23  ;;  %v1564_v23 = vpop.f32.mrb[23].mxu1  ;;  %s1437_s23 = sshll.u32 %s410_s16, 2 }
 0x5ae   : > { %s412_s28 = scalar_lea.vmem [#allocation2], %s1437_s23  ;;  %s1814_s23 = smov [#allocation2]  }
 0x5af   : > { %s1349_s26 = sshll.u32 %s412_s28, 4  ;;  %s1725_s0 = sshll.u32 %s1814_s23, 4  ;;  %s2110_s26 = int_to_ptr.vmem [resolvable:$true] %s1349_s26  ;;  %s1726_s0 = int_to_ptr.vmem [resolvable:$false] %s1725_s0 }
 0x5b0   : > { %s1721_s15 = scalar_lea.vmem %s2110_s26, 64  ;;  %s1727_s1 = scalar_lea.vmem %s1726_s0, 128 }
 0x5b1   : > { %p1722_p12 = scmp.ne.s32.totalorder %s2110_s26, %s1721_s15  ;;  %p1728_p1 = scmp.lt.s32.totalorder %s2110_s26, %s1726_s0 }
 0x5b2   : > { %p1729_p2 = scmp.lt.s32.totalorder %s1727_s1, %s1721_s15 }
 0x5b3   : > { %p1723_p13 = pnand %p1722_p12, %p1915_p4 }
 0x5b4   : > { %p1730_p3 = por %p1729_p2, %p1728_p1 }
 0x5b5   : > { %p1724_p0 = pneg %p1723_p13 }
 0x5b7   : > { %p1731_p5 = pnand %p1730_p3, %p1724_p0 }
 0x5d2   : > { %v1043_v24 = vpop.f32.mrb[24].mxu1 }
 0x5d3   : > { %v1049_v25 = vpack.c.bf16 %v1043_v24, %v1043_v24  ;;  %v1575_v26 = vpop.f32.mrb[25].mxu1 }
 0x5d4   : > { %v1046_v27 = vpop.f32.mrb[26].mxu1 }
 0x5d5   : > { %1057 = vrot.lane.b32.xlu0 %v1049_v25, %s1813_s24  ;;  %v1576_v28 = vpop.f32.mrb[27].mxu1  ;;  %s1473_s24 = sshll.u32 %s1791_s20, 6  ;;  %s1335_s20 = scalar_lea.sflag [#allocation3], %s410_s16 }
 0x5d6   : > { %s2108_s14 = scalar_lea.hbm %s2166_s11, %s1473_s24 }
 0x617   : > { %v1052_v29 = vpop.permute.xlu0 %1051 }
 0x618   : > { %v1061_v32 = vsel %vm606_vm2, %v715_v30, %v1052_v29 }
 0x61f   : > { %v1055_v31 = vpop.permute.xlu1 %1054 }
 0x620   : > { %v1064_v33 = vsel %vm1062_vm5, %v1061_v32, %v1055_v31 }
 0x647   : > { %v1058_v34 = vpop.permute.xlu0 %1057 }
 0x648   : > { %v1067_v35 = vsel %vm1065_vm6, %v1064_v33, %v1058_v34 }
 0x649   : > { %1582 = vmatmul.mubr.msk.bf16.vlgmr.msra.gmra.mrb[12].mxu0 %vm431_vm0, %v1067_v35 }
 0x64a   : > { %1609 = vmatprep.mubr.msk.bf16.mxu0 %vm1802_vm1, %v1801_v17  ;;  %1594 = vmatpush3.bf16.msra.mxu0 %v1689_v49 }
 0x64b   : > { %1595 = vmatprep.subr.bf16.mxu0 %v1801_v17 }
 0x64e   : > { %1596 = vmatpush3.bf16.msra.mxu0 %v1690_v59 }
 0x64f   : > { %1597 = vmatprep.subr.bf16.mxu0 %v1801_v17 }
 0x652   : > { %1598 = vmatpush3.bf16.msra.mxu0 %v1691_v60 }
 0x653   : > { %1599 = vmatprep.subr.bf16.mxu0 %v1801_v17 }
 0x656   : > { %1600 = vmatpush3.bf16.msra.mxu0 %v1692_v61 }
 0x657   : > { %1601 = vmatprep.subr.bf16.mxu0 %v1801_v17 }
 0x65a   : > { %1602 = vmatpush3.bf16.msra.mxu0 %v1693_v62 }
 0x65b   : > { %1603 = vmatprep.subr.bf16.mxu0 %v1801_v17 }
 0x65e   : > { %1604 = vmatpush3.bf16.msra.mxu0 %v1694_v63 }
 0x65f   : > { %1605 = vmatprep.subr.bf16.mxu0 %v1801_v17 }
 0x662   : > { %1606 = vmatpush3.bf16.msra.mxu0 %v1695_v0 }
 0x663   : > { %1607 = vmatprep.subr.bf16.mxu0 %v1801_v17 }
 0x666   : > { %1608 = vmatpush3.bf16.msra.mxu0 %v1696_v1 }
 0x71c   : > { %v1120_v36 = vpop.f32.mrb[12].mxu0 }
 0x71d   : > { %v2051_v37 = vadd.f32 %v1120_v36, %v1938_v2  ;;  %v1583_v38 = vpop.f32.mrb[13].mxu0  ;;  %v1687_v2 = vld [vmem:[%s2164_s9] sm:$0xff]  }
 0x71e   : > { %v1123_v39 = vpop.f32.mrb[14].mxu0  ;;  %1586 = vmatpush3.bf16.msra.mxu1 %v1687_v2 }
 0x71f   : > { %v1584_v40 = vpop.f32.mrb[15].mxu0  ;;  %v1129_v41 = vsel %vm431_vm0, %v2051_v37, 0.0  ;;  %1587 = vmatprep.subr.bf16.mxu1 %v1801_v17 }
 0x720   : > { %1130 = vadd.xlane.f32.xlu1 %v1129_v41 }
 0x722   : > { %1588 = vmatpush3.bf16.msra.mxu1 %v1688_v48 }
 0x7ad   : > { %v1131_v42 = vpop.xlane.xlu1 %1130 }
 0x7ae   : > { %v1132_v43 = vmul.f32 0.03125, %v1131_v42 }
 0x7b0   : > { %v1133_v44 = vsub.f32 %v2051_v37, %v1132_v43 }
 0x7b2   : > { %v1134_v46 = vmul.f32 %v1133_v44, %v1133_v44 }
 0x7b4   : > { %v1135_v47 = vsel %vm431_vm0, %v1134_v46, 0.0 }
 0x7b5   : > { %1136 = vadd.xlane.f32.xlu0 %v1135_v47 }
 0x842   : > { %v1137_v50 = vpop.xlane.xlu0 %1136 }
 0x843   : > { %v1138_v51 = vmul.f32 0.03125, %v1137_v50 }
 0x845   : > { %v1139_v52 = vadd.f32 1e-05, %v1138_v51 }
 0x847   : > { %1717 = vrsqrt.f32 %v1139_v52 }
 0x851   : > { %v1718_v53 = vpop.eup %1717 }
 0x852   : > { %v1141_v55 = vmul.f32 %v1718_v53, %v1133_v44 }
 0x854   : > { %v1148_v45 = vmul.f32 %v1459_v54, %v1141_v55 }
 0x856   : > { %v1155_v57 = vadd.f32 %v1460_v56, %v1148_v45 }
 0x858   : > { %v1156_v58 = vpack.c.bf16 %v1155_v57, %v1155_v57 }
 0x85a   : > { %1590 = vmatmul.mubr.msk.bf16.vlgmr.msra.gmra.mrb[28].mxu1 %vm431_vm0, %v1156_v58 }
 0x92d   : > { %v1210_v3 = vpop.f32.mrb[28].mxu1 }
 0x92e   : > { %v1216_v4 = vmul.f32 %v1210_v3, %v1210_v3  ;;  %v1591_v5 = vpop.f32.mrb[29].mxu1 }
 0x92f   : > { %v1213_v6 = vpop.f32.mrb[30].mxu1 }
 0x930   : > { %v1217_v7 = vmul.f32 %v1216_v4, %v1210_v3  ;;  %v1592_v8 = vpop.f32.mrb[31].mxu1 }
 0x932   : > { %v1218_v9 = vmul.f32 0.044715, %v1217_v7 }
 0x934   : > { %v1219_v10 = vadd.f32 %v1218_v9, %v1210_v3 }
 0x936   : > { %v1220_v11 = vmul.f32 0.7978846, %v1219_v10 }
 0x938   : > { %1719 = vtanh.f32 %v1220_v11 }
 0x942   : > { %v1720_v12 = vpop.eup %1719 }
 0x943   : > { %v1222_v13 = vadd.f32 1.0, %v1720_v12 }
 0x945   : > { %v1223_v17 = vmul.f32 0.5, %v1222_v13 }
 0x947   : > { %v1224_v14 = vmul.f32 %v1223_v17, %v1210_v3 }
 0x949   : > { %v1225_v15 = vpack.c.bf16 %v1224_v14, %v1224_v14 }
 0x94b   : > { %1610 = vmatmul.mubr.bf16.vlgmr.msra.gmra.mrb[16].mxu0 %v1225_v15 }
 0xa1e   : > { %v1324_v16 = vpop.f32.mrb[16].mxu0 }
 0xa1f   : > { %v1330_v18 = vadd.f32 %v1324_v16, %v2051_v37  ;;  %v1611_v19 = vpop.f32.mrb[17].mxu0 }
 0xa20   : > { %v1327_v20 = vpop.f32.mrb[18].mxu0 }
 0xa21   : > { %v1331_v21 = vpack.c.bf16 %v1330_v18, %v1330_v18  ;;  %v1612_v22 = vpop.f32.mrb[19].mxu0 }
 0xa23   : > { %1333 = vst.msk [vmem:[%s412_s28] sm:$0xf] %vm1332_vm7, %v1331_v21 }
 0xa24   : > { %1734 = shalt.err (!%p1731_p5)
}
 0xa25   : > { %s1735_s16 = scalar_lea.hbm %s2108_s14, 64  ;;  %s1739_s12 = scalar_lea.hbm %s2166_s11, 128 }
 0xa26   : > { %p1736_p6 = scmp.ne.s32.totalorder %s2108_s14, %s1735_s16  ;;  %p1740_p10 = scmp.lt.u32.totalorder %s2108_s14, %s2166_s11 }
 0xa27   : > { %p1741_p11 = scmp.lt.u32.totalorder %s1739_s12, %s1735_s16  ;;  %p1743_p13 = scmp.lt.u32.totalorder %s1735_s16, %s2108_s14 }
 0xa28   : > { %p1737_p7 = pnand %p1736_p6, %p1915_p4 }
 0xa29   : > { %p1742_p12 = por %p1741_p11, %p1740_p10 }
 0xa2a   : > { %p1738_p9 = pneg %p1737_p7 }
 0xa2b   : > { %p1744_p0 = por %p1743_p13, %p1742_p12 }
 0xa2d   : > { %p1745_p1 = pnand %p1744_p0, %p1738_p9 }
 0xa2f   : > { %1748 = shalt.err (!%p1745_p1)
}
 0xa30   : > { %1613 = dma.vmem_to_hbm [thread:$0]  (%p1915_p4), %s2110_s26, 64, %s2108_s14, %s1335_s20  }
 0xa31 PF: > { %p1619_p2 = scmp.ge.s32.totalorder %s1799_s22, 2  ;;  %s1361_s1 = sand.u32 1, %s1779_s17  }
 0xa32   : > { %s1362_s15 = scalar_lea.sflag [#allocation3], %s1361_s1 }
 0xa33   : > { %p1616_p3 = pnand %p1619_p2, %p1922_p8 }
 0xa35   : > { %1774 = dma.done.wait (!%p1616_p3), %s1362_s15, 64  }
 0xa36   : > { %1776 = vsyncadd (!%p1616_p3), %s1362_s15, 4294967232  ;;  %s24_s22 = sadd.s32 1, %s1799_s22   ;;  %s2173_s17 = smov %s1783_s18 }
 0xa37   : > { %p21_p5 = scmp.ge.s32.totalorder %s24_s22, 4   ;;  %s2174_s18 = smov %s1787_s19 }
 0xa38   : > { %s2175_s19 = smov %s1928_s30  ;;  %s2176_s20 = smov %s1795_s21 }
 0xa39   : > { %s2177_s21 = smov %s2179_s25  ;;  %23 = sbr.rel (!%p21_p5) target bundleno = 7 (0x7), region = 102 }
 0xa40   :  { %1367 = vsyncpa [#allocation3], 1 }
 0xa41   :  { %1369 = vsyncpa [#allocation3 + $0x1], 1 }

</bundles_post_ra>
